<compile_context>
chip_gen: v7x
topology: tpu7x:2x2x1
jax: 0.10.0
libtpu: 0.0.40
codegen_flags: <defaults>
</compile_context>

<pallas_src>
import functools

import jax
import jax.numpy as jnp
from jax.experimental import pallas as pl
from jax.experimental.pallas import tpu as pltpu

LANE = 128          # TPU lane width; feature dims padded to a multiple of this
SUBLANE = 8
BN_EPS = 1e-5


def _round_up(n, m):
    return ((n + m - 1) // m) * m


# --------------------------------------------------------------------------
# Fused kernel: the whole network in one Mosaic launch.
# refs = x, w0, [w_stack_hbm], gb, w_final, b_final, out, [wbuf, sem]
#   (bracketed refs only present when num_hidden > 1)
# --------------------------------------------------------------------------
def _fcn_fused_kernel(num_hidden, inv_batch, true_b, *refs):
    num_stacked = num_hidden - 1
    if num_stacked > 0:
        (x_ref, w0_ref, wstack_hbm, gb_ref, wf_ref, bf_ref,
         out_ref, wbuf, sem) = refs
    else:
        x_ref, w0_ref, gb_ref, wf_ref, bf_ref, out_ref = refs
        wstack_hbm = wbuf = sem = None

    b_pad = x_ref.shape[0]
    need_row_mask = (b_pad != true_b)          # static Python bool
    if need_row_mask:
        row_mask = (jax.lax.broadcasted_iota(jnp.int32, (b_pad, 1), 0)
                    < true_b).astype(jnp.float32)

    def layer(h_f32, w_bf16, l):
        # Linear on the MXU: bf16 operands, f32 accumulation.  Hidden bias omitted
        # (exactly cancelled by the BN mean subtraction below).
        y = jnp.dot(h_f32.astype(jnp.bfloat16), w_bf16,
                    preferred_element_type=jnp.float32)
        # BatchNorm1d (training statistics), one pass: E[y], E[y^2].
        mean = jnp.sum(y, axis=0, keepdims=True) * inv_batch
        ex2 = jnp.sum(y * y, axis=0, keepdims=True) * inv_batch
        var = jnp.maximum(ex2 - mean * mean, 0.0)        # clamp: avoid rsqrt NaN
        gb = gb_ref[l]                                   # (2, H): [gamma; beta]
        gamma, beta = gb[0:1, :], gb[1:2, :]
        scale = jax.lax.rsqrt(var + BN_EPS) * gamma      # (1, H) rows
        shift = beta - mean * scale
        h = jnp.maximum(y * scale + shift, 0.0)          # fused affine + ReLU, f32
        if need_row_mask:
            # Padded zero rows pick up `shift` through the affine; zero them so they
            # never contaminate the next layer's batch statistics.
            h = h * row_mask
        return h

    # Prefetch layer-1's weight from HBM while computing layer 0 (resident w0).
    if num_stacked > 0:
        pltpu.make_async_copy(wstack_hbm.at[0], wbuf.at[0], sem.at[0]).start()

    h = layer(x_ref[...], w0_ref[...], 0)

    for l in range(num_stacked):                         # statically unrolled
        slot = l & 1
        pltpu.make_async_copy(wstack_hbm.at[l], wbuf.at[slot], sem.at[slot]).wait()
        if l + 1 < num_stacked:
            nxt = 1 - slot
            pltpu.make_async_copy(
                wstack_hbm.at[l + 1], wbuf.at[nxt], sem.at[nxt]).start()
        h = layer(h, wbuf[slot], l + 1)

    out_ref[...] = (jnp.dot(h.astype(jnp.bfloat16), wf_ref[...],
                            preferred_element_type=jnp.float32)
                    + bf_ref[...]).astype(out_ref.dtype)


# --------------------------------------------------------------------------
# Parameters
# --------------------------------------------------------------------------
def init_params(key, input_dim, hidden_dim, num_layers, output_dim):
    """PyTorch-style uniform(-1/sqrt(fan_in), ...) init; natural (unpadded) layout."""
    params = {"hidden": [], "final": None}
    dims_in = [input_dim] + [hidden_dim] * (num_layers - 1)
    for d_in in dims_in:
        key, k_w, k_b = jax.random.split(key, 3)
        bound = 1.0 / jnp.sqrt(d_in)
        w = jax.random.uniform(k_w, (hidden_dim, d_in), jnp.float32, -bound, bound)
        b = jax.random.uniform(k_b, (1, hidden_dim), jnp.float32, -bound, bound)
        gamma = jnp.ones((1, hidden_dim), jnp.float32)   # BatchNorm1d default weight
        beta = jnp.zeros((1, hidden_dim), jnp.float32)   # BatchNorm1d default bias
        params["hidden"].append((w.T, b, gamma, beta))   # pre-transpose W to (in,out)
    key, k_w, k_b = jax.random.split(key, 3)
    bound = 1.0 / jnp.sqrt(hidden_dim)
    w = jax.random.uniform(k_w, (output_dim, hidden_dim), jnp.float32, -bound, bound)
    b = jax.random.uniform(k_b, (1, output_dim), jnp.float32, -bound, bound)
    params["final"] = (w.T, b)
    return params


def pad_params_for_kernel(params):
    """Pad feature dims to multiples of 128, cast weights to bf16, pack per-layer
    gamma/beta into one stacked array and same-shape hidden weights into one stack.

    Padded gamma/beta columns are zero, so padded feature columns stay exactly 0
    through BN+ReLU and never contaminate the next layer.  Hidden biases are not
    passed to the kernel (mathematically redundant under training-mode BN).
    """
    hidden = params["hidden"]
    num_hidden = len(hidden)
    d_in0, h_dim = hidden[0][0].shape
    d_in0_p, h_p = _round_up(d_in0, LANE), _round_up(h_dim, LANE)

    w0 = (jnp.zeros((d_in0_p, h_p), jnp.float32)
          .at[:d_in0, :h_dim].set(hidden[0][0])).astype(jnp.bfloat16)

    if num_hidden > 1:
        w_stack = jnp.zeros((num_hidden - 1, h_p, h_p), jnp.float32)
        for i, (w_t, _b, _g, _be) in enumerate(hidden[1:]):
            w_stack = w_stack.at[i, :h_dim, :h_dim].set(w_t)
        w_stack = w_stack.astype(jnp.bfloat16)
    else:
        w_stack = None

    gb = jnp.zeros((num_hidden, 2, h_p), jnp.float32)
    for i, (_w, _b, gamma, beta) in enumerate(hidden):
        gb = gb.at[i, 0, :h_dim].set(gamma[0])
        gb = gb.at[i, 1, :h_dim].set(beta[0])

    wf_t, bf = params["final"]
    o_dim = wf_t.shape[1]
    o_p = _round_up(o_dim, LANE)
    wf = (jnp.zeros((h_p, o_p), jnp.float32)
          .at[:h_dim, :o_dim].set(wf_t)).astype(jnp.bfloat16)
    bf_p = jnp.zeros((1, o_p), jnp.float32).at[:, :o_dim].set(bf)

    return {"w0": w0, "w_stack": w_stack, "gb": gb, "wf": wf, "bf": bf_p}


# --------------------------------------------------------------------------
# Forward
# --------------------------------------------------------------------------
@functools.partial(jax.jit, static_argnames=("output_dim",))
def fcn_forward(x, kparams, *, output_dim):
    B, D = x.shape
    w0, w_stack, gb = kparams["w0"], kparams["w_stack"], kparams["gb"]
    wf, bf = kparams["wf"], kparams["bf"]
    D_pad, H_pad = w0.shape
    O_pad = wf.shape[1]
    num_hidden = gb.shape[0]
    num_stacked = num_hidden - 1

    # Pad batch to a sublane multiple; padded rows are re-zeroed each layer inside
    # the kernel and excluded from BN stats (inv_batch = 1/true_B).
    B_pad = _round_up(max(B, SUBLANE), SUBLANE)
    x_pad = jnp.zeros((B_pad, D_pad), jnp.float32).at[:B, :D].set(x)

    inputs = [x_pad, w0]
    in_specs = [pl.BlockSpec(memory_space=pltpu.MemorySpace.VMEM)] * 2
    scratch = []
    if num_stacked > 0:
        inputs.append(w_stack)
        in_specs.append(pl.BlockSpec(memory_space=pl.ANY))   # stays in HBM, streamed
        scratch = [pltpu.VMEM((2, H_pad, H_pad), jnp.bfloat16),   # double buffer
                   pltpu.SemaphoreType.DMA((2,))]
    inputs += [gb, wf, bf]
    in_specs += [pl.BlockSpec(memory_space=pltpu.MemorySpace.VMEM)] * 3

    # Advisory cost estimate so XLA schedules around the fused custom call sanely.
    flops = (2 * B_pad * D_pad * H_pad
             + 2 * B_pad * H_pad * H_pad * num_stacked
             + 2 * B_pad * H_pad * O_pad)
    transcendentals = num_hidden * H_pad
    bytes_accessed = (sum(int(a.size) * a.dtype.itemsize for a in inputs)
                      + B_pad * O_pad * 4)

    # Explicit VMEM budget (defaults are 16/32 MiB scoped): resident operands +
    # double-buffered weight scratch + headroom, capped at v7x's 64 MiB.
    resident = (x_pad.size * 4 + w0.size * 2 + gb.size * 4 + wf.size * 2
                + bf.size * 4 + B_pad * O_pad * 4 + 2 * H_pad * H_pad * 2)
    vmem_limit = int(min(max(2 * resident + (16 << 20), 32 << 20), 64 << 20))

    # TODO(synk): at very large hidden_dim, also K/N-tile each layer's matmul
    # (256-multiple tiles for v6e/v7x MXU) instead of streaming whole layer weights.
    out_pad = pl.pallas_call(
        functools.partial(_fcn_fused_kernel, num_hidden, 1.0 / B, B),
        out_shape=jax.ShapeDtypeStruct((B_pad, O_pad), jnp.float32),
        in_specs=in_specs,
        out_specs=pl.BlockSpec(memory_space=pltpu.MemorySpace.VMEM),
        scratch_shapes=scratch,
        compiler_params=pltpu.CompilerParams(vmem_limit_bytes=vmem_limit),
        cost_estimate=pl.CostEstimate(flops=flops,
                                      transcendentals=transcendentals,
                                      bytes_accessed=bytes_accessed),
    )(*inputs)
    return out_pad[:B, :output_dim]


# --------------------------------------------------------------------------
# Pure-JAX reference (exact PyTorch forward semantics, including hidden biases).
# bf16_dots=True mimics the kernel's bf16 matmul operands for a tight check.
# --------------------------------------------------------------------------
def reference(x, params, *, bf16_dots=False):
    def mm(a, w):
        if bf16_dots:
            return jnp.dot(a.astype(jnp.bfloat16), w.astype(jnp.bfloat16),
                           preferred_element_type=jnp.float32)
        return jnp.dot(a, w, preferred_element_type=jnp.float32)

    h = x
    for (w_t, b, gamma, beta) in params["hidden"]:
        y = mm(h, w_t) + b
        mean = jnp.mean(y, axis=0, keepdims=True)
        var = jnp.mean((y - mean) ** 2, axis=0, keepdims=True)
        y = (y - mean) * jax.lax.rsqrt(var + BN_EPS) * gamma + beta
        h = jnp.maximum(y, 0.0)
    w_t, b = params["final"]
    return mm(h, w_t) + b


if __name__ == "__main__":
    key = jax.random.PRNGKey(0)
    batch, input_dim, hidden_dim, num_layers, output_dim = 8, 16, 32, 3, 4

    key, kx, kp = jax.random.split(key, 3)
    x = jax.random.normal(kx, (batch, input_dim), jnp.float32)
    params = init_params(kp, input_dim, hidden_dim, num_layers, output_dim)
    kparams = pad_params_for_kernel(params)

    out = fcn_forward(x, kparams, output_dim=output_dim)
    out = jax.block_until_ready(out)
    assert out.shape == (batch, output_dim)

    # Tight check against a reference that uses the same bf16 dot operands.
    ref_bf16 = reference(x, params, bf16_dots=True)
    assert jnp.allclose(out, ref_bf16, atol=2e-3, rtol=2e-3), (out, ref_bf16)
    # Gross semantic sanity vs. full-f32 PyTorch math (difference = bf16 quantization).
    ref_f32 = reference(x, params, bf16_dots=False)
    assert float(jnp.max(jnp.abs(out - ref_f32))) < 0.5, (out, ref_f32)

    print("KERNEL_OK")
</pallas_src>

<mosaic_0001>
module attributes {stable_mosaic.version = 11 : i64} {
  func.func @_fcn_fused_kernel(%arg0: memref<8x128xf32, #tpu.memory_space<vmem>>, %arg1: memref<128x128xbf16, #tpu.memory_space<vmem>>, %arg2: memref<2x128x128xbf16, #tpu.memory_space<any>>, %arg3: memref<3x2x128xf32, #tpu.memory_space<vmem>>, %arg4: memref<128x128xbf16, #tpu.memory_space<vmem>>, %arg5: memref<1x128xf32, #tpu.memory_space<vmem>>, %arg6: memref<8x128xf32, #tpu.memory_space<vmem>>, %arg7: memref<2x128x128xbf16, #tpu.memory_space<vmem>>, %arg8: memref<2x!tpu.dma_semaphore, #tpu.memory_space<semaphore_mem>>) attributes {dimension_semantics = [], scalar_prefetch = 0 : i64, scratch_operands = 2 : i64, tpu.core_type = #tpu.core_type<tc>} {
    %c0_i32 = arith.constant 0 : i32
    %c0_i32_0 = arith.constant 0 : i32
    %c0_i32_1 = arith.constant 0 : i32
    %c0_i32_2 = arith.constant 0 : i32
    %c0_i32_3 = arith.constant 0 : i32
    %0 = tpu.memref_slice %arg2[%c0_i32, %c0_i32_2, %c0_i32_3] : memref<2x128x128xbf16, #tpu.memory_space<any>> -> memref<1x128x128xbf16, #tpu.memory_space<any>>
    %1 = tpu.memref_squeeze %0 : memref<1x128x128xbf16, #tpu.memory_space<any>> -> memref<128x128xbf16, #tpu.memory_space<any>>
    %c0_i32_4 = arith.constant 0 : i32
    %c0_i32_5 = arith.constant 0 : i32
    %2 = tpu.memref_slice %arg7[%c0_i32_0, %c0_i32_4, %c0_i32_5] : memref<2x128x128xbf16, #tpu.memory_space<vmem>> -> memref<1x128x128xbf16, #tpu.memory_space<vmem>>
    %3 = tpu.memref_squeeze %2 : memref<1x128x128xbf16, #tpu.memory_space<vmem>> -> memref<128x128xbf16, #tpu.memory_space<vmem>>
    %4 = tpu.memref_slice %arg8[%c0_i32_1] : memref<2x!tpu.dma_semaphore, #tpu.memory_space<semaphore_mem>> -> memref<1x!tpu.dma_semaphore, #tpu.memory_space<semaphore_mem>>
    %5 = tpu.memref_squeeze %4 : memref<1x!tpu.dma_semaphore, #tpu.memory_space<semaphore_mem>> -> memref<!tpu.dma_semaphore, #tpu.memory_space<semaphore_mem>>
    tpu.enqueue_dma source(%1 : memref<128x128xbf16, #tpu.memory_space<any>>) target(%3 : memref<128x128xbf16, #tpu.memory_space<vmem>>) target_semaphore(%5 : memref<!tpu.dma_semaphore, #tpu.memory_space<semaphore_mem>>)
    %c0 = arith.constant 0 : index
    %c0_6 = arith.constant 0 : index
    %6 = vector.load %arg0[%c0, %c0_6] : memref<8x128xf32, #tpu.memory_space<vmem>>, vector<8x128xf32>
    %c0_7 = arith.constant 0 : index
    %c0_8 = arith.constant 0 : index
    %7 = vector.load %arg1[%c0_7, %c0_8] : memref<128x128xbf16, #tpu.memory_space<vmem>>, vector<128x128xbf16>
    %8 = arith.truncf %6 : vector<8x128xf32> to vector<8x128xbf16>
    %cst = arith.constant dense<0.000000e+00> : vector<8x128xf32>
    %9 = tpu.matmul %8, %7, %cst {dimension_numbers = #tpu.dot_dimension_numbers<[1], [0], [0], [1], [0, 0, 1, 1], [], []>} : vector<8x128xbf16>, vector<128x128xbf16>, vector<8x128xf32> -> vector<8x128xf32>
    %cst_9 = arith.constant dense<0.000000e+00> : vector<128xf32>
    %10 = vector.multi_reduction <add>, %9, %cst_9 [0] : vector<8x128xf32> to vector<128xf32>
    %11 = vector.shape_cast %10 : vector<128xf32> to vector<1x128xf32>
    %cst_10 = arith.constant 1.250000e-01 : f32
    %12 = vector.broadcast %cst_10 : f32 to vector<1x128xf32>
    %13 = arith.mulf %11, %12 : vector<1x128xf32>
    %14 = arith.mulf %9, %9 : vector<8x128xf32>
    %cst_11 = arith.constant dense<0.000000e+00> : vector<128xf32>
    %15 = vector.multi_reduction <add>, %14, %cst_11 [0] : vector<8x128xf32> to vector<128xf32>
    %16 = vector.shape_cast %15 : vector<128xf32> to vector<1x128xf32>
    %cst_12 = arith.constant 1.250000e-01 : f32
    %17 = vector.broadcast %cst_12 : f32 to vector<1x128xf32>
    %18 = arith.mulf %16, %17 : vector<1x128xf32>
    %19 = arith.mulf %13, %13 : vector<1x128xf32>
    %20 = arith.subf %18, %19 : vector<1x128xf32>
    %cst_13 = arith.constant 0.000000e+00 : f32
    %21 = vector.broadcast %cst_13 : f32 to vector<1x128xf32>
    %22 = arith.maximumf %20, %21 : vector<1x128xf32>
    %c0_14 = arith.constant 0 : index
    %c0_15 = arith.constant 0 : index
    %c0_16 = arith.constant 0 : index
    %23 = vector.load %arg3[%c0_14, %c0_15, %c0_16] : memref<3x2x128xf32, #tpu.memory_space<vmem>>, vector<1x2x128xf32>
    %24 = vector.shape_cast %23 : vector<1x2x128xf32> to vector<2x128xf32>
    %25 = vector.extract_strided_slice %24 {offsets = [0, 0], sizes = [1, 128], strides = [1, 1]} : vector<2x128xf32> to vector<1x128xf32>
    %26 = vector.extract_strided_slice %24 {offsets = [1, 0], sizes = [1, 128], strides = [1, 1]} : vector<2x128xf32> to vector<1x128xf32>
    %cst_17 = arith.constant 9.99999974E-6 : f32
    %27 = vector.broadcast %cst_17 : f32 to vector<1x128xf32>
    %28 = arith.addf %22, %27 : vector<1x128xf32>
    %29 = math.rsqrt %28 : vector<1x128xf32>
    %30 = arith.mulf %29, %25 : vector<1x128xf32>
    %31 = arith.mulf %13, %30 : vector<1x128xf32>
    %32 = arith.subf %26, %31 : vector<1x128xf32>
    %33 = vector.broadcast %30 : vector<1x128xf32> to vector<8x128xf32>
    %34 = arith.mulf %9, %33 : vector<8x128xf32>
    %35 = vector.broadcast %32 : vector<1x128xf32> to vector<8x128xf32>
    %36 = arith.addf %34, %35 : vector<8x128xf32>
    %cst_18 = arith.constant 0.000000e+00 : f32
    %37 = vector.broadcast %cst_18 : f32 to vector<8x128xf32>
    %38 = arith.maximumf %36, %37 : vector<8x128xf32>
    %c0_i32_19 = arith.constant 0 : i32
    %c0_i32_20 = arith.constant 0 : i32
    %c0_i32_21 = arith.constant 0 : i32
    %c0_i32_22 = arith.constant 0 : i32
    %c0_i32_23 = arith.constant 0 : i32
    %39 = tpu.memref_slice %arg2[%c0_i32_19, %c0_i32_22, %c0_i32_23] : memref<2x128x128xbf16, #tpu.memory_space<any>> -> memref<1x128x128xbf16, #tpu.memory_space<any>>
    %40 = tpu.memref_squeeze %39 : memref<1x128x128xbf16, #tpu.memory_space<any>> -> memref<128x128xbf16, #tpu.memory_space<any>>
    %c0_i32_24 = arith.constant 0 : i32
    %c0_i32_25 = arith.constant 0 : i32
    %41 = tpu.memref_slice %arg7[%c0_i32_20, %c0_i32_24, %c0_i32_25] : memref<2x128x128xbf16, #tpu.memory_space<vmem>> -> memref<1x128x128xbf16, #tpu.memory_space<vmem>>
    %42 = tpu.memref_squeeze %41 : memref<1x128x128xbf16, #tpu.memory_space<vmem>> -> memref<128x128xbf16, #tpu.memory_space<vmem>>
    %43 = tpu.memref_slice %arg8[%c0_i32_21] : memref<2x!tpu.dma_semaphore, #tpu.memory_space<semaphore_mem>> -> memref<1x!tpu.dma_semaphore, #tpu.memory_space<semaphore_mem>>
    %44 = tpu.memref_squeeze %43 : memref<1x!tpu.dma_semaphore, #tpu.memory_space<semaphore_mem>> -> memref<!tpu.dma_semaphore, #tpu.memory_space<semaphore_mem>>
    tpu.wait_dma2 semaphore(%44 : memref<!tpu.dma_semaphore, #tpu.memory_space<semaphore_mem>>) src(%40 : memref<128x128xbf16, #tpu.memory_space<any>>) dst(%42 : memref<128x128xbf16, #tpu.memory_space<vmem>>)
    %c1_i32 = arith.constant 1 : i32
    %c1_i32_26 = arith.constant 1 : i32
    %c1_i32_27 = arith.constant 1 : i32
    %c0_i32_28 = arith.constant 0 : i32
    %c0_i32_29 = arith.constant 0 : i32
    %45 = tpu.memref_slice %arg2[%c1_i32, %c0_i32_28, %c0_i32_29] : memref<2x128x128xbf16, #tpu.memory_space<any>> -> memref<1x128x128xbf16, #tpu.memory_space<any>>
    %46 = tpu.memref_squeeze %45 : memref<1x128x128xbf16, #tpu.memory_space<any>> -> memref<128x128xbf16, #tpu.memory_space<any>>
    %c0_i32_30 = arith.constant 0 : i32
    %c0_i32_31 = arith.constant 0 : i32
    %47 = tpu.memref_slice %arg7[%c1_i32_26, %c0_i32_30, %c0_i32_31] : memref<2x128x128xbf16, #tpu.memory_space<vmem>> -> memref<1x128x128xbf16, #tpu.memory_space<vmem>>
    %48 = tpu.memref_squeeze %47 : memref<1x128x128xbf16, #tpu.memory_space<vmem>> -> memref<128x128xbf16, #tpu.memory_space<vmem>>
    %49 = tpu.memref_slice %arg8[%c1_i32_27] : memref<2x!tpu.dma_semaphore, #tpu.memory_space<semaphore_mem>> -> memref<1x!tpu.dma_semaphore, #tpu.memory_space<semaphore_mem>>
    %50 = tpu.memref_squeeze %49 : memref<1x!tpu.dma_semaphore, #tpu.memory_space<semaphore_mem>> -> memref<!tpu.dma_semaphore, #tpu.memory_space<semaphore_mem>>
    tpu.enqueue_dma source(%46 : memref<128x128xbf16, #tpu.memory_space<any>>) target(%48 : memref<128x128xbf16, #tpu.memory_space<vmem>>) target_semaphore(%50 : memref<!tpu.dma_semaphore, #tpu.memory_space<semaphore_mem>>)
    %c0_32 = arith.constant 0 : index
    %c0_33 = arith.constant 0 : index
    %c0_34 = arith.constant 0 : index
    %51 = vector.load %arg7[%c0_32, %c0_33, %c0_34] : memref<2x128x128xbf16, #tpu.memory_space<vmem>>, vector<1x128x128xbf16>
    %52 = vector.shape_cast %51 : vector<1x128x128xbf16> to vector<128x128xbf16>
    %53 = arith.truncf %38 : vector<8x128xf32> to vector<8x128xbf16>
    %cst_35 = arith.constant dense<0.000000e+00> : vector<8x128xf32>
    %54 = tpu.matmul %53, %52, %cst_35 {dimension_numbers = #tpu.dot_dimension_numbers<[1], [0], [0], [1], [0, 0, 1, 1], [], []>} : vector<8x128xbf16>, vector<128x128xbf16>, vector<8x128xf32> -> vector<8x128xf32>
    %cst_36 = arith.constant dense<0.000000e+00> : vector<128xf32>
    %55 = vector.multi_reduction <add>, %54, %cst_36 [0] : vector<8x128xf32> to vector<128xf32>
    %56 = vector.shape_cast %55 : vector<128xf32> to vector<1x128xf32>
    %cst_37 = arith.constant 1.250000e-01 : f32
    %57 = vector.broadcast %cst_37 : f32 to vector<1x128xf32>
    %58 = arith.mulf %56, %57 : vector<1x128xf32>
    %59 = arith.mulf %54, %54 : vector<8x128xf32>
    %cst_38 = arith.constant dense<0.000000e+00> : vector<128xf32>
    %60 = vector.multi_reduction <add>, %59, %cst_38 [0] : vector<8x128xf32> to vector<128xf32>
    %61 = vector.shape_cast %60 : vector<128xf32> to vector<1x128xf32>
    %cst_39 = arith.constant 1.250000e-01 : f32
    %62 = vector.broadcast %cst_39 : f32 to vector<1x128xf32>
    %63 = arith.mulf %61, %62 : vector<1x128xf32>
    %64 = arith.mulf %58, %58 : vector<1x128xf32>
    %65 = arith.subf %63, %64 : vector<1x128xf32>
    %cst_40 = arith.constant 0.000000e+00 : f32
    %66 = vector.broadcast %cst_40 : f32 to vector<1x128xf32>
    %67 = arith.maximumf %65, %66 : vector<1x128xf32>
    %c1 = arith.constant 1 : index
    %c0_41 = arith.constant 0 : index
    %c0_42 = arith.constant 0 : index
    %68 = vector.load %arg3[%c1, %c0_41, %c0_42] : memref<3x2x128xf32, #tpu.memory_space<vmem>>, vector<1x2x128xf32>
    %69 = vector.shape_cast %68 : vector<1x2x128xf32> to vector<2x128xf32>
    %70 = vector.extract_strided_slice %69 {offsets = [0, 0], sizes = [1, 128], strides = [1, 1]} : vector<2x128xf32> to vector<1x128xf32>
    %71 = vector.extract_strided_slice %69 {offsets = [1, 0], sizes = [1, 128], strides = [1, 1]} : vector<2x128xf32> to vector<1x128xf32>
    %cst_43 = arith.constant 9.99999974E-6 : f32
    %72 = vector.broadcast %cst_43 : f32 to vector<1x128xf32>
    %73 = arith.addf %67, %72 : vector<1x128xf32>
    %74 = math.rsqrt %73 : vector<1x128xf32>
    %75 = arith.mulf %74, %70 : vector<1x128xf32>
    %76 = arith.mulf %58, %75 : vector<1x128xf32>
    %77 = arith.subf %71, %76 : vector<1x128xf32>
    %78 = vector.broadcast %75 : vector<1x128xf32> to vector<8x128xf32>
    %79 = arith.mulf %54, %78 : vector<8x128xf32>
    %80 = vector.broadcast %77 : vector<1x128xf32> to vector<8x128xf32>
    %81 = arith.addf %79, %80 : vector<8x128xf32>
    %cst_44 = arith.constant 0.000000e+00 : f32
    %82 = vector.broadcast %cst_44 : f32 to vector<8x128xf32>
    %83 = arith.maximumf %81, %82 : vector<8x128xf32>
    %c1_i32_45 = arith.constant 1 : i32
    %c1_i32_46 = arith.constant 1 : i32
    %c1_i32_47 = arith.constant 1 : i32
    %c0_i32_48 = arith.constant 0 : i32
    %c0_i32_49 = arith.constant 0 : i32
    %84 = tpu.memref_slice %arg2[%c1_i32_45, %c0_i32_48, %c0_i32_49] : memref<2x128x128xbf16, #tpu.memory_space<any>> -> memref<1x128x128xbf16, #tpu.memory_space<any>>
    %85 = tpu.memref_squeeze %84 : memref<1x128x128xbf16, #tpu.memory_space<any>> -> memref<128x128xbf16, #tpu.memory_space<any>>
    %c0_i32_50 = arith.constant 0 : i32
    %c0_i32_51 = arith.constant 0 : i32
    %86 = tpu.memref_slice %arg7[%c1_i32_46, %c0_i32_50, %c0_i32_51] : memref<2x128x128xbf16, #tpu.memory_space<vmem>> -> memref<1x128x128xbf16, #tpu.memory_space<vmem>>
    %87 = tpu.memref_squeeze %86 : memref<1x128x128xbf16, #tpu.memory_space<vmem>> -> memref<128x128xbf16, #tpu.memory_space<vmem>>
    %88 = tpu.memref_slice %arg8[%c1_i32_47] : memref<2x!tpu.dma_semaphore, #tpu.memory_space<semaphore_mem>> -> memref<1x!tpu.dma_semaphore, #tpu.memory_space<semaphore_mem>>
    %89 = tpu.memref_squeeze %88 : memref<1x!tpu.dma_semaphore, #tpu.memory_space<semaphore_mem>> -> memref<!tpu.dma_semaphore, #tpu.memory_space<semaphore_mem>>
    tpu.wait_dma2 semaphore(%89 : memref<!tpu.dma_semaphore, #tpu.memory_space<semaphore_mem>>) src(%85 : memref<128x128xbf16, #tpu.memory_space<any>>) dst(%87 : memref<128x128xbf16, #tpu.memory_space<vmem>>)
    %c1_52 = arith.constant 1 : index
    %c0_53 = arith.constant 0 : index
    %c0_54 = arith.constant 0 : index
    %90 = vector.load %arg7[%c1_52, %c0_53, %c0_54] : memref<2x128x128xbf16, #tpu.memory_space<vmem>>, vector<1x128x128xbf16>
    %91 = vector.shape_cast %90 : vector<1x128x128xbf16> to vector<128x128xbf16>
    %92 = arith.truncf %83 : vector<8x128xf32> to vector<8x128xbf16>
    %cst_55 = arith.constant dense<0.000000e+00> : vector<8x128xf32>
    %93 = tpu.matmul %92, %91, %cst_55 {dimension_numbers = #tpu.dot_dimension_numbers<[1], [0], [0], [1], [0, 0, 1, 1], [], []>} : vector<8x128xbf16>, vector<128x128xbf16>, vector<8x128xf32> -> vector<8x128xf32>
    %cst_56 = arith.constant dense<0.000000e+00> : vector<128xf32>
    %94 = vector.multi_reduction <add>, %93, %cst_56 [0] : vector<8x128xf32> to vector<128xf32>
    %95 = vector.shape_cast %94 : vector<128xf32> to vector<1x128xf32>
    %cst_57 = arith.constant 1.250000e-01 : f32
    %96 = vector.broadcast %cst_57 : f32 to vector<1x128xf32>
    %97 = arith.mulf %95, %96 : vector<1x128xf32>
    %98 = arith.mulf %93, %93 : vector<8x128xf32>
    %cst_58 = arith.constant dense<0.000000e+00> : vector<128xf32>
    %99 = vector.multi_reduction <add>, %98, %cst_58 [0] : vector<8x128xf32> to vector<128xf32>
    %100 = vector.shape_cast %99 : vector<128xf32> to vector<1x128xf32>
    %cst_59 = arith.constant 1.250000e-01 : f32
    %101 = vector.broadcast %cst_59 : f32 to vector<1x128xf32>
    %102 = arith.mulf %100, %101 : vector<1x128xf32>
    %103 = arith.mulf %97, %97 : vector<1x128xf32>
    %104 = arith.subf %102, %103 : vector<1x128xf32>
    %cst_60 = arith.constant 0.000000e+00 : f32
    %105 = vector.broadcast %cst_60 : f32 to vector<1x128xf32>
    %106 = arith.maximumf %104, %105 : vector<1x128xf32>
    %c2 = arith.constant 2 : index
    %c0_61 = arith.constant 0 : index
    %c0_62 = arith.constant 0 : index
    %107 = vector.load %arg3[%c2, %c0_61, %c0_62] : memref<3x2x128xf32, #tpu.memory_space<vmem>>, vector<1x2x128xf32>
    %108 = vector.shape_cast %107 : vector<1x2x128xf32> to vector<2x128xf32>
    %109 = vector.extract_strided_slice %108 {offsets = [0, 0], sizes = [1, 128], strides = [1, 1]} : vector<2x128xf32> to vector<1x128xf32>
    %110 = vector.extract_strided_slice %108 {offsets = [1, 0], sizes = [1, 128], strides = [1, 1]} : vector<2x128xf32> to vector<1x128xf32>
    %cst_63 = arith.constant 9.99999974E-6 : f32
    %111 = vector.broadcast %cst_63 : f32 to vector<1x128xf32>
    %112 = arith.addf %106, %111 : vector<1x128xf32>
    %113 = math.rsqrt %112 : vector<1x128xf32>
    %114 = arith.mulf %113, %109 : vector<1x128xf32>
    %115 = arith.mulf %97, %114 : vector<1x128xf32>
    %116 = arith.subf %110, %115 : vector<1x128xf32>
    %117 = vector.broadcast %114 : vector<1x128xf32> to vector<8x128xf32>
    %118 = arith.mulf %93, %117 : vector<8x128xf32>
    %119 = vector.broadcast %116 : vector<1x128xf32> to vector<8x128xf32>
    %120 = arith.addf %118, %119 : vector<8x128xf32>
    %cst_64 = arith.constant 0.000000e+00 : f32
    %121 = vector.broadcast %cst_64 : f32 to vector<8x128xf32>
    %122 = arith.maximumf %120, %121 : vector<8x128xf32>
    %123 = arith.truncf %122 : vector<8x128xf32> to vector<8x128xbf16>
    %c0_65 = arith.constant 0 : index
    %c0_66 = arith.constant 0 : index
    %124 = vector.load %arg4[%c0_65, %c0_66] : memref<128x128xbf16, #tpu.memory_space<vmem>>, vector<128x128xbf16>
    %cst_67 = arith.constant dense<0.000000e+00> : vector<8x128xf32>
    %125 = tpu.matmul %123, %124, %cst_67 {dimension_numbers = #tpu.dot_dimension_numbers<[1], [0], [0], [1], [0, 0, 1, 1], [], []>} : vector<8x128xbf16>, vector<128x128xbf16>, vector<8x128xf32> -> vector<8x128xf32>
    %c0_68 = arith.constant 0 : index
    %c0_69 = arith.constant 0 : index
    %126 = vector.load %arg5[%c0_68, %c0_69] : memref<1x128xf32, #tpu.memory_space<vmem>>, vector<1x128xf32>
    %127 = vector.broadcast %126 : vector<1x128xf32> to vector<8x128xf32>
    %128 = arith.addf %125, %127 : vector<8x128xf32>
    %c0_70 = arith.constant 0 : index
    %c0_71 = arith.constant 0 : index
    %129 = vector.load %arg6[%c0_70, %c0_71] : memref<8x128xf32, #tpu.memory_space<vmem>>, vector<8x128xf32>
    tpu.vector_store %arg6[%c0_70, %c0_71], %128 {strides = array<i32>} : memref<8x128xf32, #tpu.memory_space<vmem>>, vector<8x128xf32>,
    return
  }
}

</mosaic_0001>

<bundles_post_ra>
// kernel: fcn_forward.1
= control target key start
LH: loop header
LB: loop body
LE: loop exit
PB: predicated region body
PF: predicated region fallthrough
CT: control target
= control target key end

     0   :  { %11 = vsyncpa [#allocation5], 0  ;;  %s991_s0 = inlined_call_operand.vmem [shape: f32[8,128], index: 0, kind: input, shape index: {}]   ;;  %s992_s1 = inlined_call_operand.hbm [shape: bf16[128,128], index: 1, kind: input, shape index: {}]   ;;  %s993_s2 = inlined_call_operand.hbm [shape: bf16[2,128,128], index: 2, kind: input, shape index: {}]   ;;  %s994_s3 = inlined_call_operand.vmem [shape: f32[3,2,128], index: 3, kind: input, shape index: {}]   ;;  %s995_s4 = inlined_call_operand.hbm [shape: bf16[128,128], index: 4, kind: input, shape index: {}]   ;;  %s996_s5 = inlined_call_operand.vmem [shape: f32[1,128], index: 5, kind: input, shape index: {}]   ;;  %s997_s6 = inlined_call_operand.vmem [shape: f32[8,128], index: 6, kind: output, shape index: {}]  }
   0x1   :  { %12 = vsyncpa [#allocation7], 0  ;;  %s799_s21 = smov [#allocation4]   ;;  %s700_s25 = scalar_lea.hbm %s992_s1, 1024 }
   0x2   :  { %s20_s22 = sshll.u32 %s799_s21, 4  ;;  %p701_p0 = scmp.ne.s32.totalorder %s992_s1, %s700_s25  ;;  %s21_s22 = int_to_ptr.vmem [resolvable:$true] %s20_s22 }
   0x3   :  { %p704_p1 = scmp.lt.u32.totalorder %s700_s25, %s992_s1 }
   0x5   :  { %p706_p2 = pnand %p704_p1, %p701_p0 }
   0x7   :  { %709 = shalt.err (!%p706_p2)
}
   0x8   :  { %s710_s30 = scalar_lea.vmem %s21_s22, 1024  ;;  %p715_p4 = scmp.lt.s32.totalorder %s21_s22, %s21_s22 }
   0x9   :  { %p711_p3 = scmp.ne.s32.totalorder %s21_s22, %s710_s30  ;;  %p716_p5 = scmp.lt.s32.totalorder %s710_s30, %s710_s30 }
   0xb   :  { %p717_p6 = por %p716_p5, %p715_p4 }
   0xd   :  { %p718_p7 = pnand %p717_p6, %p711_p3 }
   0xf   :  { %721 = shalt.err (!%p718_p7)
}
  0x10   :  { %s800_s7 = smov 64   ;;  %s801_s8 = smov 4  }
  0x11   :  { %26 = dma.hbm_to_vmem [thread:$0]  %s992_s1, 1024, %s21_s22, [#allocation5], %s800_s7, %s800_s7, %s801_s8  }
  0x12   :  { %s802_s11 = smov [#allocation6]   ;;  %s722_s15 = scalar_lea.hbm %s995_s4, 1024 }
  0x13   :  { %s34_s12 = sshll.u32 %s802_s11, 4  ;;  %p723_p8 = scmp.ne.s32.totalorder %s995_s4, %s722_s15  ;;  %s35_s12 = int_to_ptr.vmem [resolvable:$true] %s34_s12 }
  0x14   :  { %p726_p9 = scmp.lt.u32.totalorder %s722_s15, %s995_s4 }
  0x16   :  { %p728_p10 = pnand %p726_p9, %p723_p8 }
  0x18   :  { %731 = shalt.err (!%p728_p10)
}
  0x19   :  { %s732_s20 = scalar_lea.vmem %s35_s12, 1024  ;;  %p737_p12 = scmp.lt.s32.totalorder %s35_s12, %s35_s12 }
  0x1a   :  { %p733_p11 = scmp.ne.s32.totalorder %s35_s12, %s732_s20  ;;  %p738_p13 = scmp.lt.s32.totalorder %s732_s20, %s732_s20 }
  0x1c   :  { %p739_p0 = por %p738_p13, %p737_p12 }
  0x1e   :  { %p740_p1 = pnand %p739_p0, %p733_p11 }
  0x20   :  { %743 = shalt.err (!%p740_p1)
}
  0x21   :  { %40 = dma.hbm_to_vmem [thread:$0]  %s995_s4, 1024, %s35_s12, [#allocation7], %s800_s7, %s800_s7, %s801_s8  }
  0x22   :  { %791 = dma.done.wait [#allocation5], 1024  }
  0x23   :  { %792 = vsyncadd [#allocation5], 4294966272 }
  0x24   :  { %793 = dma.done.wait [#allocation7], 1024  }
  0x25   :  { %794 = vsyncadd [#allocation7], 4294966272  ;;  %v803_v0 = vmov 0.0   ;;  %vm804_vm0 = vmmov 0   ;;  %v678_v1 = vld [vmem:[#allocation4] sm:$0xff]   ;;  %v679_v2 = vld [vmem:[#allocation4 + $0x8] sm:$0xff]  }
  0x26   :  { %590 = vmatprep.subr.bf16.mxu0 %v803_v0  ;;  %606 = vmatprep.mubr.msk.bf16.mxu0 %vm804_vm0, %v803_v0  ;;  %v680_v3 = vld [vmem:[#allocation4 + $0x10] sm:$0xff]   ;;  %v681_v4 = vld [vmem:[#allocation4 + $0x18] sm:$0xff]   ;;  %v682_v5 = vld [vmem:[#allocation4 + $0x20] sm:$0xff]   ;;  %s805_s23 = smov [#allocation2]   ;;  %s884_s27 = scalar_lea.hbm %s993_s2, 1024 }
  0x27   :  { %591 = vmatpush3.bf16.msra.mxu0 %v678_v1  ;;  %v683_v6 = vld [vmem:[#allocation4 + $0x28] sm:$0xff]   ;;  %v684_v7 = vld [vmem:[#allocation4 + $0x30] sm:$0xff]   ;;  %v685_v8 = vld [vmem:[#allocation4 + $0x38] sm:$0xff]   ;;  %s57_s24 = sshll.u32 %s805_s23, 4  ;;  %p745_p2 = scmp.ne.s32.totalorder %s993_s2, %s884_s27  ;;  %s879_s24 = int_to_ptr.vmem [resolvable:$true] %s57_s24 }
  0x28   :  { %592 = vmatprep.subr.bf16.mxu0 %v803_v0  ;;  %v61_v9 = vld [vmem:[%s991_s0] sm:$0xff]  ;;  %s893_s7 = scalar_lea.hbm %s993_s2, 2048  ;;  %p748_p4 = scmp.lt.u32.totalorder %s884_s27, %s993_s2 }
  0x29   :  { %v78_v10 = vpack.c.bf16 %v61_v9, %v61_v9  ;;  %p747_p3 = scmp.lt.u32.totalorder %s893_s7, %s884_s27 }
  0x2b   :  { %593 = vmatpush3.bf16.msra.mxu0 %v679_v2  ;;  %p749_p5 = por %p748_p4, %p747_p3 }
  0x2c   :  { %594 = vmatprep.subr.bf16.mxu0 %v803_v0 }
  0x2d   :  { %p750_p6 = pnand %p749_p5, %p745_p2 }
  0x2f   :  { %595 = vmatpush3.bf16.msra.mxu0 %v680_v3 }
  0x30   :  { %596 = vmatprep.subr.bf16.mxu0 %v803_v0 }
  0x33   :  { %597 = vmatpush3.bf16.msra.mxu0 %v681_v4 }
  0x34   :  { %598 = vmatprep.subr.bf16.mxu0 %v803_v0 }
  0x37   :  { %599 = vmatpush3.bf16.msra.mxu0 %v682_v5 }
  0x38   :  { %600 = vmatprep.subr.bf16.mxu0 %v803_v0 }
  0x3b   :  { %601 = vmatpush3.bf16.msra.mxu0 %v683_v6 }
  0x3c   :  { %602 = vmatprep.subr.bf16.mxu0 %v803_v0 }
  0x3f   :  { %603 = vmatpush3.bf16.msra.mxu0 %v684_v7 }
  0x40   :  { %604 = vmatprep.subr.bf16.mxu0 %v803_v0 }
  0x43   :  { %605 = vmatpush3.bf16.msra.mxu0 %v685_v8 }
  0x46   :  { %607 = vmatmul.mubr.bf16.vlgmr.msra.gmra.mrb[0].mxu0 %v78_v10 }
  0x47   :  { %753 = shalt.err (!%p750_p6)  }
  0x48   :  { %s754_s12 = scalar_lea.vmem %s879_s24, 1024  ;;  %s758_s13 = scalar_lea.vmem %s879_s24, 2048 }
  0x49   :  { %p755_p7 = scmp.ne.s32.totalorder %s879_s24, %s754_s12  ;;  %p759_p8 = scmp.lt.s32.totalorder %s879_s24, %s879_s24 }
  0x4a   :  { %p760_p9 = scmp.lt.s32.totalorder %s758_s13, %s754_s12 }
  0x4c   :  { %p761_p10 = por %p760_p9, %p759_p8 }
  0x4e   :  { %p762_p11 = pnand %p761_p10, %p755_p7 }
  0x50   :  { %765 = shalt.err (!%p762_p11)  }
  0x51   :  { %60 = dma.hbm_to_vmem [thread:$0]  %s993_s2, 1024, %s879_s24, [#allocation3]  ;;  %v194_v34 = vlaneseq  ;;  %v185_v36 = vld [vmem:[%s994_s3] sm:$0x3] }
  0x53   :  { %v195_v35 = vshrl.u32 %v194_v34, 7 }
  0x55   :  { %v923_v39 = vsub.s32 0, %v195_v35  ;;  %v926_v43 = vsub.s32 1, %v195_v35 }
 0x119   :  { %v161_v11 = vpop.f32.mrb[0].mxu0 }
 0x11a   :  { %v167_v12 = vrot.slane %v161_v11, 4  ;;  %v174_v13 = vmul.f32 %v161_v11, %v161_v11  ;;  %v608_v14 = vpop.f32.mrb[1].mxu0 }
 0x11b   :  { %v164_v15 = vpop.f32.mrb[2].mxu0 }
 0x11c   :  { %v168_v16 = vadd.f32 %v167_v12, %v161_v11  ;;  %v175_v17 = vrot.slane %v174_v13, 4  ;;  %v609_v18 = vpop.f32.mrb[3].mxu0 }
 0x11e   :  { %v169_v19 = vrot.slane %v168_v16, 2  ;;  %v176_v20 = vadd.f32 %v175_v17, %v174_v13 }
 0x120   :  { %v170_v21 = vadd.f32 %v169_v19, %v168_v16  ;;  %v177_v22 = vrot.slane %v176_v20, 2 }
 0x122   :  { %v171_v23 = vrot.slane %v170_v21, 1  ;;  %v178_v24 = vadd.f32 %v177_v22, %v176_v20 }
 0x124   :  { %v172_v25 = vadd.f32 %v171_v23, %v170_v21  ;;  %v179_v26 = vrot.slane %v178_v24, 1 }
 0x126   :  { %v173_v27 = vmul.f32 0.125, %v172_v25  ;;  %v180_v28 = vadd.f32 %v179_v26, %v178_v24 }
 0x128   :  { %v181_v29 = vmul.f32 0.125, %v180_v28  ;;  %v182_v30 = vmul.f32 %v173_v27, %v173_v27 }
 0x12a   :  { %v183_v31 = vsub.f32 %v181_v29, %v182_v30 }
 0x12c   :  { %v184_v32 = vmax.f32 %v183_v31, 0.0 }
 0x12e   :  { %v186_v33 = vadd.f32 1e-05, %v184_v32 }
 0x130   :  { %686 = vrsqrt.f32 %v186_v33 }
 0x13a   :  { %v687_v37 = vpop.eup %686 }
 0x13b   :  { %v188_v38 = vmul.f32 %v687_v37, %v185_v36 }
 0x13d   :  { %v189_v40 = vmul.f32 %v188_v38, %v173_v27  ;;  %v197_v42 = vrot.slane %v188_v38, %v923_v39 }
 0x13f   :  { %v191_v41 = vrot.slane %v189_v40, 7  ;;  %v198_v45 = vmul.f32 %v197_v42, %v161_v11 }
 0x141   :  { %v193_v44 = vsub.f32 %v185_v36, %v191_v41 }
 0x143   :  { %v202_v46 = vrot.slane %v193_v44, %v926_v43 }
 0x145   :  { %v203_v47 = vadd.f32 %v202_v46, %v198_v45 }
 0x147   :  { %v204_v48 = vmax.f32 %v203_v47, 0.0 }
 0x148   :  { %795 = dma.done.wait [#allocation3], 1024 }
 0x149   :  { %796 = vsyncadd [#allocation3], 4294966272  ;;  %610 = vmatprep.subr.bf16.mxu1 %v803_v0  ;;  %626 = vmatprep.mubr.msk.bf16.mxu1 %vm804_vm0, %v803_v0  ;;  %s806_s18 = smov [#allocation2 + $0x40]   ;;  %p767_p12 = scmp.ne.s32.totalorder %s884_s27, %s893_s7 }
 0x14a   :  { %s219_s19 = sshll.u32 %s806_s18, 4  ;;  %p770_p13 = scmp.lt.u32.totalorder %s893_s7, %s893_s7  ;;  %s220_s19 = int_to_ptr.vmem [resolvable:$true] %s219_s19 }
 0x14c   :  { %p771_p0 = por %p770_p13, %p748_p4 }
 0x14e   :  { %p773_p1 = por %p771_p0, %p747_p3 }
 0x150   :  { %p774_p2 = pnand %p773_p1, %p767_p12 }
 0x152   :  { %777 = shalt.err (!%p774_p2)  }
 0x153   :  { %s778_s21 = scalar_lea.vmem %s220_s19, 1024  ;;  %p783_p6 = scmp.lt.s32.totalorder %s220_s19, %s879_s24 }
 0x154   :  { %p779_p5 = scmp.ne.s32.totalorder %s220_s19, %s778_s21  ;;  %p784_p7 = scmp.lt.s32.totalorder %s758_s13, %s778_s21 }
 0x156   :  { %p785_p8 = por %p784_p7, %p783_p6 }
 0x158   :  { %p786_p9 = pnand %p785_p8, %p779_p5 }
 0x15a   :  { %789 = shalt.err (!%p786_p9)  }
 0x15b   :  { %222 = dma.hbm_to_vmem [thread:$0]  %s884_s27, 1024, %s220_s19, [#allocation3 + $0x1]  ;;  %v231_v57 = vpack.c.bf16 %v204_v48, %v204_v48  ;;  %v541_v18 = vld [vmem:[%s994_s3 + $0x2] sm:$0x3] }
 0x15c   :  { %v223_v49 = vld [vmem:[#allocation2] sm:$0xff]  ;;  %v224_v50 = vld [vmem:[#allocation2 + $0x8] sm:$0xff]  ;;  %v225_v51 = vld [vmem:[#allocation2 + $0x10] sm:$0xff] }
 0x15d   :  { %611 = vmatpush3.bf16.msra.mxu1 %v223_v49  ;;  %v226_v52 = vld [vmem:[#allocation2 + $0x18] sm:$0xff]  ;;  %v227_v53 = vld [vmem:[#allocation2 + $0x20] sm:$0xff]  ;;  %v228_v54 = vld [vmem:[#allocation2 + $0x28] sm:$0xff] }
 0x15e   :  { %612 = vmatprep.subr.bf16.mxu1 %v803_v0  ;;  %v229_v55 = vld [vmem:[#allocation2 + $0x30] sm:$0xff]  ;;  %v230_v56 = vld [vmem:[#allocation2 + $0x38] sm:$0xff] }
 0x161   :  { %613 = vmatpush3.bf16.msra.mxu1 %v224_v50 }
 0x162   :  { %614 = vmatprep.subr.bf16.mxu1 %v803_v0 }
 0x165   :  { %615 = vmatpush3.bf16.msra.mxu1 %v225_v51 }
 0x166   :  { %616 = vmatprep.subr.bf16.mxu1 %v803_v0 }
 0x169   :  { %617 = vmatpush3.bf16.msra.mxu1 %v226_v52 }
 0x16a   :  { %618 = vmatprep.subr.bf16.mxu1 %v803_v0 }
 0x16d   :  { %619 = vmatpush3.bf16.msra.mxu1 %v227_v53 }
 0x16e   :  { %620 = vmatprep.subr.bf16.mxu1 %v803_v0 }
 0x171   :  { %621 = vmatpush3.bf16.msra.mxu1 %v228_v54 }
 0x172   :  { %622 = vmatprep.subr.bf16.mxu1 %v803_v0 }
 0x175   :  { %623 = vmatpush3.bf16.msra.mxu1 %v229_v55 }
 0x176   :  { %624 = vmatprep.subr.bf16.mxu1 %v803_v0 }
 0x179   :  { %625 = vmatpush3.bf16.msra.mxu1 %v230_v56 }
 0x17c   :  { %627 = vmatmul.mubr.bf16.vlgmr.msra.gmra.mrb[0].mxu1 %v231_v57 }
 0x24f   :  { %v266_v58 = vpop.f32.mrb[0].mxu1 }
 0x250   :  { %v272_v59 = vrot.slane %v266_v58, 4  ;;  %v279_v60 = vmul.f32 %v266_v58, %v266_v58  ;;  %v628_v61 = vpop.f32.mrb[1].mxu1 }
 0x251   :  { %v269_v62 = vpop.f32.mrb[2].mxu1 }
 0x252   :  { %v273_v63 = vadd.f32 %v272_v59, %v266_v58  ;;  %v280_v1 = vrot.slane %v279_v60, 4  ;;  %v629_v2 = vpop.f32.mrb[3].mxu1 }
 0x254   :  { %v274_v3 = vrot.slane %v273_v63, 2  ;;  %v281_v4 = vadd.f32 %v280_v1, %v279_v60 }
 0x256   :  { %v275_v5 = vadd.f32 %v274_v3, %v273_v63  ;;  %v282_v6 = vrot.slane %v281_v4, 2 }
 0x258   :  { %v276_v7 = vrot.slane %v275_v5, 1  ;;  %v283_v8 = vadd.f32 %v282_v6, %v281_v4 }
 0x25a   :  { %v277_v9 = vadd.f32 %v276_v7, %v275_v5  ;;  %v284_v10 = vrot.slane %v283_v8, 1 }
 0x25c   :  { %v278_v11 = vmul.f32 0.125, %v277_v9  ;;  %v285_v12 = vadd.f32 %v284_v10, %v283_v8 }
 0x25e   :  { %v286_v13 = vmul.f32 0.125, %v285_v12  ;;  %v287_v14 = vmul.f32 %v278_v11, %v278_v11 }
 0x260   :  { %v288_v15 = vsub.f32 %v286_v13, %v287_v14 }
 0x262   :  { %v289_v16 = vmax.f32 %v288_v15, 0.0 }
 0x264   :  { %v292_v17 = vadd.f32 1e-05, %v289_v16 }
 0x266   :  { %688 = vrsqrt.f32 %v292_v17 }
 0x270   :  { %v689_v19 = vpop.eup %688 }
 0x271   :  { %v294_v20 = vmul.f32 %v689_v19, %v541_v18 }
 0x273   :  { %v295_v21 = vmul.f32 %v294_v20, %v278_v11  ;;  %v303_v23 = vrot.slane %v294_v20, %v923_v39 }
 0x275   :  { %v297_v22 = vrot.slane %v295_v21, 7  ;;  %v304_v25 = vmul.f32 %v303_v23, %v266_v58 }
 0x277   :  { %v299_v24 = vsub.f32 %v541_v18, %v297_v22 }
 0x279   :  { %v308_v26 = vrot.slane %v299_v24, %v926_v43 }
 0x27b   :  { %v309_v27 = vadd.f32 %v308_v26, %v304_v25 }
 0x27d   :  { %v310_v28 = vmax.f32 %v309_v27, 0.0 }
 0x27e   :  { %797 = dma.done.wait [#allocation3 + $0x1], 1024 }
 0x27f   :  { %798 = vsyncadd [#allocation3 + $0x1], 4294966272  ;;  %630 = vmatprep.subr.bf16.mxu0 %v803_v0  ;;  %646 = vmatprep.mubr.msk.bf16.mxu0 %vm804_vm0, %v803_v0  ;;  %v313_v29 = vld [vmem:[#allocation2 + $0x40] sm:$0xff]  ;;  %v314_v30 = vld [vmem:[#allocation2 + $0x48] sm:$0xff]  ;;  %v321_v37 = vpack.c.bf16 %v310_v28, %v310_v28 }
 0x280   :  { %650 = vmatprep.subr.bf16.mxu1 %v803_v0  ;;  %666 = vmatprep.mubr.msk.bf16.mxu1 %vm804_vm0, %v803_v0  ;;  %v315_v31 = vld [vmem:[#allocation2 + $0x50] sm:$0xff]  ;;  %v316_v32 = vld [vmem:[#allocation2 + $0x58] sm:$0xff]  ;;  %v317_v33 = vld [vmem:[#allocation2 + $0x60] sm:$0xff] }
 0x281   :  { %631 = vmatpush3.bf16.msra.mxu0 %v313_v29  ;;  %v318_v34 = vld [vmem:[#allocation2 + $0x68] sm:$0xff]  ;;  %v319_v35 = vld [vmem:[#allocation2 + $0x70] sm:$0xff]  ;;  %v320_v36 = vld [vmem:[#allocation2 + $0x78] sm:$0xff] }
 0x282   :  { %632 = vmatprep.subr.bf16.mxu0 %v803_v0  ;;  %v690_v38 = vld [vmem:[#allocation6] sm:$0xff]   ;;  %v691_v40 = vld [vmem:[#allocation6 + $0x8] sm:$0xff]   ;;  %v692_v41 = vld [vmem:[#allocation6 + $0x10] sm:$0xff]  }
 0x283   :  { %651 = vmatpush3.bf16.msra.mxu1 %v690_v38  ;;  %v693_v42 = vld [vmem:[#allocation6 + $0x18] sm:$0xff]   ;;  %v694_v44 = vld [vmem:[#allocation6 + $0x20] sm:$0xff]   ;;  %v695_v45 = vld [vmem:[#allocation6 + $0x28] sm:$0xff]  }
 0x284   :  { %652 = vmatprep.subr.bf16.mxu1 %v803_v0  ;;  %v696_v46 = vld [vmem:[#allocation6 + $0x30] sm:$0xff]   ;;  %v697_v47 = vld [vmem:[#allocation6 + $0x38] sm:$0xff]   ;;  %v542_v7 = vld [vmem:[%s994_s3 + $0x4] sm:$0x3] }
 0x285   :  { %633 = vmatpush3.bf16.msra.mxu0 %v314_v30  ;;  %v543_v19 = vld [vmem:[%s996_s5] ss:$0 sm:$0xff] }
 0x286   :  { %634 = vmatprep.subr.bf16.mxu0 %v803_v0 }
 0x287   :  { %653 = vmatpush3.bf16.msra.mxu1 %v691_v40 }
 0x288   :  { %654 = vmatprep.subr.bf16.mxu1 %v803_v0 }
 0x289   :  { %635 = vmatpush3.bf16.msra.mxu0 %v315_v31 }
 0x28a   :  { %636 = vmatprep.subr.bf16.mxu0 %v803_v0 }
 0x28b   :  { %655 = vmatpush3.bf16.msra.mxu1 %v692_v41 }
 0x28c   :  { %656 = vmatprep.subr.bf16.mxu1 %v803_v0 }
 0x28d   :  { %637 = vmatpush3.bf16.msra.mxu0 %v316_v32 }
 0x28e   :  { %638 = vmatprep.subr.bf16.mxu0 %v803_v0 }
 0x28f   :  { %657 = vmatpush3.bf16.msra.mxu1 %v693_v42 }
 0x290   :  { %658 = vmatprep.subr.bf16.mxu1 %v803_v0 }
 0x291   :  { %639 = vmatpush3.bf16.msra.mxu0 %v317_v33 }
 0x292   :  { %640 = vmatprep.subr.bf16.mxu0 %v803_v0 }
 0x293   :  { %659 = vmatpush3.bf16.msra.mxu1 %v694_v44 }
 0x294   :  { %660 = vmatprep.subr.bf16.mxu1 %v803_v0 }
 0x295   :  { %641 = vmatpush3.bf16.msra.mxu0 %v318_v34 }
 0x296   :  { %642 = vmatprep.subr.bf16.mxu0 %v803_v0 }
 0x297   :  { %661 = vmatpush3.bf16.msra.mxu1 %v695_v45 }
 0x298   :  { %662 = vmatprep.subr.bf16.mxu1 %v803_v0 }
 0x299   :  { %643 = vmatpush3.bf16.msra.mxu0 %v319_v35 }
 0x29a   :  { %644 = vmatprep.subr.bf16.mxu0 %v803_v0 }
 0x29b   :  { %663 = vmatpush3.bf16.msra.mxu1 %v696_v46 }
 0x29c   :  { %664 = vmatprep.subr.bf16.mxu1 %v803_v0 }
 0x29d   :  { %645 = vmatpush3.bf16.msra.mxu0 %v320_v36 }
 0x29f   :  { %665 = vmatpush3.bf16.msra.mxu1 %v697_v47 }
 0x2a0   :  { %647 = vmatmul.mubr.bf16.vlgmr.msra.gmra.mrb[4].mxu0 %v321_v37 }
 0x373   :  { %v356_v48 = vpop.f32.mrb[4].mxu0 }
 0x374   :  { %v362_v49 = vrot.slane %v356_v48, 4  ;;  %v369_v50 = vmul.f32 %v356_v48, %v356_v48  ;;  %v648_v51 = vpop.f32.mrb[5].mxu0 }
 0x375   :  { %v359_v52 = vpop.f32.mrb[6].mxu0 }
 0x376   :  { %v363_v53 = vadd.f32 %v362_v49, %v356_v48  ;;  %v370_v54 = vrot.slane %v369_v50, 4  ;;  %v649_v55 = vpop.f32.mrb[7].mxu0 }
 0x378   :  { %v364_v56 = vrot.slane %v363_v53, 2  ;;  %v371_v57 = vadd.f32 %v370_v54, %v369_v50 }
 0x37a   :  { %v365_v58 = vadd.f32 %v364_v56, %v363_v53  ;;  %v372_v59 = vrot.slane %v371_v57, 2 }
 0x37c   :  { %v366_v60 = vrot.slane %v365_v58, 1  ;;  %v373_v61 = vadd.f32 %v372_v59, %v371_v57 }
 0x37e   :  { %v367_v62 = vadd.f32 %v366_v60, %v365_v58  ;;  %v374_v63 = vrot.slane %v373_v61, 1 }
 0x380   :  { %v368_v1 = vmul.f32 0.125, %v367_v62  ;;  %v375_v2 = vadd.f32 %v374_v63, %v373_v61 }
 0x382   :  { %v376_v0 = vmul.f32 0.125, %v375_v2  ;;  %v377_v3 = vmul.f32 %v368_v1, %v368_v1 }
 0x384   :  { %v378_v4 = vsub.f32 %v376_v0, %v377_v3 }
 0x386   :  { %v379_v5 = vmax.f32 %v378_v4, 0.0 }
 0x388   :  { %v382_v6 = vadd.f32 1e-05, %v379_v5 }
 0x38a   :  { %698 = vrsqrt.f32 %v382_v6 }
 0x394   :  { %v699_v8 = vpop.eup %698 }
 0x395   :  { %v384_v9 = vmul.f32 %v699_v8, %v542_v7 }
 0x397   :  { %v385_v10 = vmul.f32 %v384_v9, %v368_v1  ;;  %v393_v11 = vrot.slane %v384_v9, %v923_v39 }
 0x399   :  { %v387_v12 = vrot.slane %v385_v10, 7  ;;  %v394_v14 = vmul.f32 %v393_v11, %v356_v48 }
 0x39b   :  { %v389_v13 = vsub.f32 %v542_v7, %v387_v12 }
 0x39d   :  { %v398_v15 = vrot.slane %v389_v13, %v926_v43 }
 0x39f   :  { %v399_v16 = vadd.f32 %v398_v15, %v394_v14 }
 0x3a1   :  { %v400_v17 = vmax.f32 %v399_v16, 0.0 }
 0x3a3   :  { %v401_v18 = vpack.c.bf16 %v400_v17, %v400_v17 }
 0x3a5   :  { %667 = vmatmul.mubr.bf16.vlgmr.msra.gmra.mrb[4].mxu1 %v401_v18 }
 0x478   :  { %v507_v20 = vpop.f32.mrb[4].mxu1 }
 0x479   :  { %v508_v21 = vadd.f32 %v543_v19, %v507_v20  ;;  %v668_v22 = vpop.f32.mrb[5].mxu1 }
 0x47a   :  { %v510_v23 = vpop.f32.mrb[6].mxu1 }
 0x47b   :  { %513 = vst [vmem:[%s997_s6] sm:$0xff] %v508_v21  ;;  %v669_v39 = vpop.f32.mrb[7].mxu1 }
 0x47c   :  { %518 = vsyncpa [#allocation5], 1 }
 0x47d   :  { %519 = vsyncpa [#allocation7], 1 }
 0x47e   :  { %520 = vsyncmov [#allocation3] }
 0x481   :  { %s521_s27 = vpop.sfrf %520 }
 0x482   :  { %p552_p3 = scmp.ne.s32.totalorder %s521_s27, 0 }
 0x484   :  { %525 = shalt.err (%p552_p3)  }
 0x485   :  { %527 = vsyncmov [#allocation3 + $0x1] }
 0x488   :  { %s528_s28 = vpop.sfrf %527 }
 0x489   :  { %p553_p4 = scmp.ne.s32.totalorder %s528_s28, 0 }
 0x48b   :  { %532 = shalt.err (%p553_p4)  }

</bundles_post_ra>
